<compile_context>
chip_gen: v7x
topology: tpu7x:2x2x1
jax: 0.10.0
libtpu: 0.0.40
codegen_flags: <defaults>
</compile_context>

<pallas_src>
import jax
import jax.numpy as jnp
from jax.experimental import pallas as pl
from jax.experimental.pallas import tpu as pltpu


def _broadcast_rows_kernel(const_ref, out_ref):
    # const_ref: (1, lane)           — one lane-dense row of the constant
    # out_ref:   (block_rows, lane)  — a block of output rows
    out_ref[...] = jnp.broadcast_to(const_ref[...], out_ref.shape)


_TARGET_BLOCK_BYTES = 4 * 1024 * 1024   # ~4 MiB output block (mem-bound plateau)
_TINY_BYTES = 64 * 1024                 # below this, a kernel cannot win


def learned_constant_forward(constant, batch_size, *, use_pallas=None):
    """StyleGAN2 LearnedConstant forward: (1, C, 4, 4) -> (batch_size, C, 4, 4)."""
    _, c, h, w = constant.shape
    feat = c * h * w
    itemsize = jnp.dtype(constant.dtype).itemsize
    out_bytes = batch_size * feat * itemsize

    if use_pallas is None:
        use_pallas = out_bytes >= _TINY_BYTES
    if not use_pallas:
        # Tiny instantiation: let XLA fuse the broadcast into the consumer.
        return jnp.broadcast_to(constant, (batch_size, c, h, w))

    # ---- choose a lane-dense 2D view of the output -------------------------
    if feat % 128 == 0:
        # Last dim already a multiple of 128: (B, feat) is lane-dense.
        rows, lane = batch_size, feat
        const_row = constant.reshape(1, feat)
    elif (128 % feat == 0) and (batch_size * feat) % 128 == 0:
        # Pack several batch items into each 128-lane row -> unmasked stores.
        per_row = 128 // feat
        rows, lane = (batch_size * feat) // 128, 128
        const_row = jnp.tile(constant.reshape(1, feat), (1, per_row))
    else:
        # Fallback: last block dim equals the full array dim (always legal);
        # stores may be masked for lane widths not a multiple of 128.
        rows, lane = batch_size, feat
        const_row = constant.reshape(1, feat)

    # ---- size the block in bytes, not rows ----------------------------------
    row_bytes = lane * itemsize
    max_rows = max(8, (_TARGET_BLOCK_BYTES // row_bytes) // 8 * 8)
    block_rows = min(rows, max_rows)
    if rows >= 16:
        # Keep >= 2 grid steps so ("parallel",) can shard across 2 TCs on v7x.
        half = -(-rows // 2)          # ceil(rows / 2)
        half = -(-half // 8) * 8      # round up to a multiple of 8
        block_rows = min(block_rows, half)

    grid_rows = pl.cdiv(rows, block_rows)

    cost = pl.CostEstimate(
        flops=0,
        transcendentals=0,
        bytes_accessed=rows * lane * itemsize + lane * itemsize,
    )

    out_2d = pl.pallas_call(
        _broadcast_rows_kernel,
        out_shape=jax.ShapeDtypeStruct((rows, lane), constant.dtype),
        grid_spec=pltpu.PrefetchScalarGridSpec(
            num_scalar_prefetch=0,
            grid=(grid_rows,),
            in_specs=[
                # Same constant tile for every grid step (block index fixed).
                pl.BlockSpec((1, lane), lambda b: (0, 0)),
            ],
            out_specs=pl.BlockSpec((block_rows, lane), lambda b: (b, 0)),
        ),
        compiler_params=pltpu.CompilerParams(
            dimension_semantics=("parallel",),
        ),
        cost_estimate=cost,
    )(const_row)

    # Back to NCHW for the caller (layout-only, row-major preserving).
    return out_2d.reshape(batch_size, c, h, w)


if __name__ == "__main__":
    key = jax.random.PRNGKey(0)
    k1, k2 = jax.random.split(key)

    # Case 1: module-consistent small shapes (B=2, C=4) — packed 128-lane path.
    in_c, batch = 4, 2
    constant = jax.random.normal(k1, (1, in_c, 4, 4), dtype=jnp.float32)
    out = jax.block_until_ready(
        learned_constant_forward(constant, batch, use_pallas=True)
    )
    ref = jnp.broadcast_to(constant, (batch, in_c, 4, 4))
    assert out.shape == ref.shape and out.dtype == ref.dtype
    assert jnp.array_equal(out, ref)

    # Case 2: feat % 128 == 0 path with a multi-step parallel grid, still small.
    in_c2, batch2 = 8, 16
    constant2 = jax.random.normal(k2, (1, in_c2, 4, 4), dtype=jnp.float32)
    out2 = jax.block_until_ready(
        learned_constant_forward(constant2, batch2, use_pallas=True)
    )
    ref2 = jnp.broadcast_to(constant2, (batch2, in_c2, 4, 4))
    assert out2.shape == ref2.shape and jnp.array_equal(out2, ref2)

    print("KERNEL_OK")
</pallas_src>

<mosaic_0001>
module attributes {stable_mosaic.version = 11 : i64} {
  func.func @_broadcast_rows_kernel(%arg0: i32, %arg1: memref<1x128xf32, #tpu.memory_space<vmem>>, %arg2: memref<1x128xf32, #tpu.memory_space<vmem>>) attributes {dimension_semantics = [#tpu.dimension_semantics<parallel>], iteration_bounds = array<i64: 1>, scalar_prefetch = 0 : i64, scratch_operands = 0 : i64, tpu.core_type = #tpu.core_type<tc>, window_params = [{pipeline_mode = #tpu.pipeline_mode<synchronous>, transform_indices = @transform_0, window_bounds = array<i64: 1, 128>}, {transform_indices = @transform_1, window_bounds = array<i64: 1, 128>}]} {
    %c0 = arith.constant 0 : index
    %c0_0 = arith.constant 0 : index
    %0 = vector.load %arg1[%c0, %c0_0] : memref<1x128xf32, #tpu.memory_space<vmem>>, vector<1x128xf32>
    %c0_1 = arith.constant 0 : index
    %c0_2 = arith.constant 0 : index
    %1 = vector.load %arg2[%c0_1, %c0_2] : memref<1x128xf32, #tpu.memory_space<vmem>>, vector<1x128xf32>
    tpu.vector_store %arg2[%c0_1, %c0_2], %0 {strides = array<i32>} : memref<1x128xf32, #tpu.memory_space<vmem>>, vector<1x128xf32>,
    return
  }
  func.func @transform_0(%arg0: i32) -> (i32, i32) {
    %c0_i32 = arith.constant 0 : i32
    %c0_i32_0 = arith.constant 0 : i32
    %c0_i32_1 = arith.constant 0 : i32
    return %c0_i32, %c0_i32_0 : i32, i32
  }
  func.func @transform_1(%arg0: i32) -> (i32, i32) {
    %c0_i32 = arith.constant 0 : i32
    %c0_i32_0 = arith.constant 0 : i32
    return %arg0, %c0_i32 : i32, i32
  }
}

</mosaic_0001>

<bundles_post_ra>
// kernel: tpu_custom_call.1
= control target key start
LH: loop header
LB: loop body
LE: loop exit
PB: predicated region body
PF: predicated region fallthrough
CT: control target
= control target key end

     0   :  { %6 = vsyncpa [#allocation3], 0  ;;  %s124_s0 = inlined_call_operand.hbm [shape: f32[1,128], index: 0, kind: input, shape index: {}]   ;;  %s125_s1 = inlined_call_operand.hbm [shape: f32[1,128], index: 1, kind: output, shape index: {}]  }
   0x1   :  { %7 = vsyncpa [#allocation4], 0  ;;  %s88_s6 = smov [#allocation2]   ;;  %s40_s10 = scalar_lea.hbm %s124_s0, 16 }
   0x2   :  { %s14_s7 = sshll.u32 %s88_s6, 4  ;;  %p41_p0 = scmp.ne.s32.totalorder %s124_s0, %s40_s10  ;;  %s15_s7 = int_to_ptr.vmem [resolvable:$true] %s14_s7 }
   0x3   :  { %p44_p1 = scmp.lt.u32.totalorder %s40_s10, %s124_s0 }
   0x5   :  { %p46_p2 = pnand %p44_p1, %p41_p0 }
   0x7   :  { %49 = shalt.err (!%p46_p2)
}
   0x8   :  { %s50_s15 = scalar_lea.vmem %s15_s7, 16  ;;  %s54_s16 = scalar_lea.vmem %s15_s7, 32 }
   0x9   :  { %p51_p3 = scmp.ne.s32.totalorder %s15_s7, %s50_s15  ;;  %p55_p4 = scmp.lt.s32.totalorder %s15_s7, %s15_s7 }
   0xa   :  { %p56_p5 = scmp.lt.s32.totalorder %s54_s16, %s50_s15 }
   0xc   :  { %p57_p6 = por %p56_p5, %p55_p4 }
   0xe   :  { %p58_p7 = pnand %p57_p6, %p51_p3 }
  0x10   :  { %61 = shalt.err (!%p58_p7)
}
  0x11   :  { %17 = dma.hbm_to_vmem [thread:$0]  %s124_s0, 16, %s15_s7, [#allocation3]  }
  0x12   :  { %84 = dma.done.wait [#allocation3], 16  }
  0x13   :  { %85 = vsyncadd [#allocation3], 4294967280  ;;  %s89_s19 = smov [#allocation5]   ;;  %v21_v0 = vld [vmem:[#allocation2] sm:$0x1] }
  0x14   :  { %s29_s20 = sshll.u32 %s89_s19, 4  ;;  %22 = vst [vmem:[#allocation5] sm:$0x1] %v21_v0  ;;  %s30_s20 = int_to_ptr.vmem [resolvable:$true] %s29_s20 }
  0x15   :  { %s62_s21 = scalar_lea.vmem %s30_s20, 16  ;;  %s66_s22 = scalar_lea.vmem %s30_s20, 32 }
  0x16   :  { %p63_p8 = scmp.ne.s32.totalorder %s30_s20, %s62_s21  ;;  %p67_p9 = scmp.lt.s32.totalorder %s30_s20, %s30_s20 }
  0x17   :  { %p68_p10 = scmp.lt.s32.totalorder %s66_s22, %s62_s21 }
  0x19   :  { %p69_p11 = por %p68_p10, %p67_p9 }
  0x1b   :  { %p70_p12 = pnand %p69_p11, %p63_p8 }
  0x1d   :  { %73 = shalt.err (!%p70_p12)
}
  0x1e   :  { %s74_s25 = scalar_lea.hbm %s125_s1, 16 }
  0x1f   :  { %p75_p13 = scmp.ne.s32.totalorder %s125_s1, %s74_s25  ;;  %p78_p0 = scmp.lt.u32.totalorder %s74_s25, %s125_s1 }
  0x21   :  { %p80_p1 = pnand %p78_p0, %p75_p13 }
  0x23   :  { %83 = shalt.err (!%p80_p1)
}
  0x24   :  { %32 = dma.vmem_to_hbm [thread:$0]  %s30_s20, 16, %s125_s1, [#allocation4]  }
  0x25   :  { %86 = dma.done.wait [#allocation4], 16  }
  0x26   :  { %87 = vsyncadd [#allocation4], 4294967280 }
  0x27   :  { %36 = vsyncpa [#allocation3], 1 }
  0x28   :  { %37 = vsyncpa [#allocation4], 1 }

</bundles_post_ra>
